<compile_context>
chip_gen: v5e
topology: v5e:2x2
jax: 0.10.0
libtpu: 0.0.40
codegen_flags: <defaults>
</compile_context>

<pallas_src>
import functools

import jax
import jax.numpy as jnp
from jax.experimental import pallas as pl
from jax.experimental.pallas import tpu as pltpu


def _round_up(x, m):
    return ((x + m - 1) // m) * m


def _cls_head_kernel(x_ref, w1_ref, b1_ref, w2_ref, b2_ref, out_ref):
    # x_ref:  [tb, H]   bf16  (CLS rows for this grid step)
    # w1_ref: [H, H]    bf16  (dense weight, already transposed to [in, out])
    # b1_ref: [1, H]    f32
    # w2_ref: [H, Lp]   bf16  (out_proj weight, transposed + lane-padded)
    # b2_ref: [1, Lp]   f32
    # out_ref:[tb, Lp]  f32
    #
    # dropout is an inference-time no-op (identity) in both places.
    h = jnp.dot(x_ref[...], w1_ref[...], preferred_element_type=jnp.float32)
    h = jnp.tanh(h + b1_ref[...])          # bias add + tanh in f32 (v5e-safe)
    y = jnp.dot(h.astype(w2_ref.dtype), w2_ref[...],
                preferred_element_type=jnp.float32)
    out_ref[...] = (y + b2_ref[...]).astype(out_ref.dtype)


def prepare_roberta_head_params(w_dense, b_dense, w_out, b_out,
                                *, weights_dtype=jnp.bfloat16):
    """One-time (model init) weight preparation.  Accepts PyTorch layouts:

        w_dense: [H, H]  == dense.weight      b_dense: [H]
        w_out:   [L, H]  == out_proj.weight   b_out:   [L]

    Returns a params dict with transposed / bf16-cast / lane-padded tensors.
    Do NOT call this per forward pass — that would re-introduce per-call
    HBM traffic comparable to the kernel itself.
    """
    w_dense = jnp.asarray(w_dense)
    w_out = jnp.asarray(w_out)
    H = w_dense.shape[0]
    if w_dense.shape != (H, H):
        raise ValueError(f"dense.weight must be [H, H], got {w_dense.shape}")
    L, Hw = w_out.shape
    if Hw != H:
        raise ValueError(f"out_proj.weight must be [L, {H}], got {w_out.shape}")

    lp = max(128, _round_up(L, 128))        # lane-dense output width
    w1 = w_dense.T.astype(weights_dtype)                                # [H, H]
    b1 = jnp.asarray(b_dense).astype(jnp.float32).reshape(1, H)         # [1, H]
    w2 = jnp.zeros((H, lp), weights_dtype).at[:, :L].set(
        w_out.T.astype(weights_dtype))                                  # [H, Lp]
    b2 = jnp.zeros((1, lp), jnp.float32).at[:, :L].set(
        jnp.asarray(b_out).astype(jnp.float32).reshape(1, L))           # [1, Lp]
    return {"w1": w1, "b1": b1, "w2": w2, "b2": b2,
            "hidden": H, "num_labels": L}


@functools.partial(jax.jit, static_argnames=("num_labels", "block_b"))
def _forward_impl(features, w1, b1, w2, b2, *, num_labels, block_b):
    B, S, H = features.shape
    lp = w2.shape[1]

    # CLS slice in the weights dtype: never DMA the [B, S, H] tensor, and the
    # activation tile is bf16 (half the f32 DMA).  This is a tiny fused XLA
    # slice+cast; the strided-DMA-from-3D alternative is a further option.
    cls = features[:, 0, :].astype(w1.dtype)                 # [B, H]

    # Batch tile: multiple of 16 sublanes (bf16 packing) and sized so the grid
    # has >= 2 steps whenever B allows it -> both v7x TCs used, DMA/compute
    # overlap on v5e/v6e.  Weights stay resident (constant index_maps).
    tb = min(block_b, _round_up(pl.cdiv(B, 2), 16))
    tb = _round_up(tb, 16)
    bp = _round_up(B, tb)
    if bp != B:
        cls = jnp.pad(cls, ((0, bp - B), (0, 0)))
    grid = (bp // tb,)

    bytes_accessed = (cls.size * cls.dtype.itemsize
                      + w1.size * w1.dtype.itemsize
                      + b1.size * b1.dtype.itemsize
                      + w2.size * w2.dtype.itemsize
                      + b2.size * b2.dtype.itemsize
                      + bp * lp * 4)
    cost = pl.CostEstimate(
        flops=2 * bp * H * H + 2 * bp * H * lp,
        transcendentals=bp * H,
        bytes_accessed=bytes_accessed)

    out = pl.pallas_call(
        _cls_head_kernel,
        out_shape=jax.ShapeDtypeStruct((bp, lp), jnp.float32),
        grid=grid,
        in_specs=[
            pl.BlockSpec((tb, H), lambda i: (i, 0)),   # CLS rows: tiled over batch
            pl.BlockSpec((H, H), lambda i: (0, 0)),    # dense weight: resident
            pl.BlockSpec((1, H), lambda i: (0, 0)),    # dense bias:   resident
            pl.BlockSpec((H, lp), lambda i: (0, 0)),   # out_proj weight (padded)
            pl.BlockSpec((1, lp), lambda i: (0, 0)),   # out_proj bias   (padded)
        ],
        out_specs=pl.BlockSpec((tb, lp), lambda i: (i, 0)),
        compiler_params=pltpu.CompilerParams(
            dimension_semantics=("parallel",)),
        cost_estimate=cost,
    )(cls, w1, b1, w2, b2)

    return out[:B, :num_labels]


def roberta_classification_head(features, params, *, block_b=256):
    """features: [B, S, H] (any float dtype).  params: prepare_roberta_head_params().
    Returns logits [B, num_labels] in float32 (dropout is identity at inference)."""
    return _forward_impl(features, params["w1"], params["b1"],
                         params["w2"], params["b2"],
                         num_labels=params["num_labels"], block_b=block_b)


def _reference(features, w_dense, b_dense, w_out, b_out):
    """Pure-JAX reference emulating the kernel's bf16 inputs + f32 accumulation.
    Weights are in PyTorch layout ([out, in])."""
    def bf16_rt(a):
        return a.astype(jnp.bfloat16).astype(jnp.float32)

    x = bf16_rt(features[:, 0, :])
    h = jnp.tanh(jnp.dot(x, bf16_rt(w_dense.T),
                         precision=jax.lax.Precision.HIGHEST)
                 + b_dense.astype(jnp.float32))
    return (jnp.dot(bf16_rt(h), bf16_rt(w_out.T),
                    precision=jax.lax.Precision.HIGHEST)
            + b_out.astype(jnp.float32))


def _run_case(key, B, S, H, L, atol, rtol):
    k_feat, k_w1, k_b1, k_w2, k_b2 = jax.random.split(key, 5)
    features = jax.random.normal(k_feat, (B, S, H), dtype=jnp.float32)
    # Deterministic synthetic parameters in PyTorch nn.Linear layout.
    w_dense = jax.random.normal(k_w1, (H, H), dtype=jnp.float32) * 0.02
    b_dense = jax.random.normal(k_b1, (H,), dtype=jnp.float32) * 0.02
    w_out = jax.random.normal(k_w2, (L, H), dtype=jnp.float32) * 0.02
    b_out = jax.random.normal(k_b2, (L,), dtype=jnp.float32) * 0.02

    params = prepare_roberta_head_params(w_dense, b_dense, w_out, b_out)
    out = roberta_classification_head(features, params)
    out = jax.block_until_ready(out)

    ref = _reference(features, w_dense, b_dense, w_out, b_out)
    assert out.shape == (B, L), (out.shape, (B, L))
    assert jnp.allclose(out, ref, atol=atol, rtol=rtol), (
        f"mismatch B={B} S={S} H={H} L={L}: "
        f"max|d|={float(jnp.max(jnp.abs(out - ref)))}")


if __name__ == "__main__":
    key = jax.random.PRNGKey(0)
    k1, k2 = jax.random.split(key)

    # Small config: batch=2, seq=8, hidden=32, num_labels=4.
    _run_case(k1, B=2, S=8, H=32, L=4, atol=1e-4, rtol=1e-3)

    # Larger config exercising lane padding (L=5 -> 128), batch padding and a
    # multi-step batch grid (B=24 -> tb=16, grid=(2,)) on the MXU path.
    _run_case(k2, B=24, S=16, H=256, L=5, atol=2e-3, rtol=1e-2)

    print("KERNEL_OK")
</pallas_src>

<mosaic_0001>
module attributes {stable_mosaic.version = 11 : i64} {
  func.func @_cls_head_kernel(%arg0: i32, %arg1: memref<16x32xbf16, #tpu.memory_space<vmem>>, %arg2: memref<32x32xbf16, #tpu.memory_space<vmem>>, %arg3: memref<1x32xf32, #tpu.memory_space<vmem>>, %arg4: memref<32x128xbf16, #tpu.memory_space<vmem>>, %arg5: memref<1x128xf32, #tpu.memory_space<vmem>>, %arg6: memref<16x128xf32, #tpu.memory_space<vmem>>) attributes {dimension_semantics = [#tpu.dimension_semantics<parallel>], iteration_bounds = array<i64: 1>, scalar_prefetch = 0 : i64, scratch_operands = 0 : i64, tpu.core_type = #tpu.core_type<tc>, window_params = [{transform_indices = @transform_0, window_bounds = array<i64: 16, 32>}, {pipeline_mode = #tpu.pipeline_mode<synchronous>, transform_indices = @transform_1, window_bounds = array<i64: 32, 32>}, {pipeline_mode = #tpu.pipeline_mode<synchronous>, transform_indices = @transform_2, window_bounds = array<i64: 1, 32>}, {pipeline_mode = #tpu.pipeline_mode<synchronous>, transform_indices = @transform_3, window_bounds = array<i64: 32, 128>}, {pipeline_mode = #tpu.pipeline_mode<synchronous>, transform_indices = @transform_4, window_bounds = array<i64: 1, 128>}, {transform_indices = @transform_5, window_bounds = array<i64: 16, 128>}]} {
    %c0 = arith.constant 0 : index
    %c0_0 = arith.constant 0 : index
    %0 = vector.load %arg1[%c0, %c0_0] : memref<16x32xbf16, #tpu.memory_space<vmem>>, vector<16x32xbf16>
    %c0_1 = arith.constant 0 : index
    %c0_2 = arith.constant 0 : index
    %1 = vector.load %arg2[%c0_1, %c0_2] : memref<32x32xbf16, #tpu.memory_space<vmem>>, vector<32x32xbf16>
    %cst = arith.constant dense<0.000000e+00> : vector<16x32xf32>
    %2 = tpu.matmul %0, %1, %cst {dimension_numbers = #tpu.dot_dimension_numbers<[1], [0], [0], [1], [0, 0, 1, 1], [], []>} : vector<16x32xbf16>, vector<32x32xbf16>, vector<16x32xf32> -> vector<16x32xf32>
    %c0_3 = arith.constant 0 : index
    %c0_4 = arith.constant 0 : index
    %3 = vector.load %arg3[%c0_3, %c0_4] : memref<1x32xf32, #tpu.memory_space<vmem>>, vector<1x32xf32>
    %4 = vector.broadcast %3 : vector<1x32xf32> to vector<16x32xf32>
    %5 = arith.addf %2, %4 : vector<16x32xf32>
    %6 = math.tanh %5 : vector<16x32xf32>
    %7 = arith.truncf %6 : vector<16x32xf32> to vector<16x32xbf16>
    %c0_5 = arith.constant 0 : index
    %c0_6 = arith.constant 0 : index
    %8 = vector.load %arg4[%c0_5, %c0_6] : memref<32x128xbf16, #tpu.memory_space<vmem>>, vector<32x128xbf16>
    %cst_7 = arith.constant dense<0.000000e+00> : vector<16x128xf32>
    %9 = tpu.matmul %7, %8, %cst_7 {dimension_numbers = #tpu.dot_dimension_numbers<[1], [0], [0], [1], [0, 0, 1, 1], [], []>} : vector<16x32xbf16>, vector<32x128xbf16>, vector<16x128xf32> -> vector<16x128xf32>
    %c0_8 = arith.constant 0 : index
    %c0_9 = arith.constant 0 : index
    %10 = vector.load %arg5[%c0_8, %c0_9] : memref<1x128xf32, #tpu.memory_space<vmem>>, vector<1x128xf32>
    %11 = vector.broadcast %10 : vector<1x128xf32> to vector<16x128xf32>
    %12 = arith.addf %9, %11 : vector<16x128xf32>
    %c0_10 = arith.constant 0 : index
    %c0_11 = arith.constant 0 : index
    %13 = vector.load %arg6[%c0_10, %c0_11] : memref<16x128xf32, #tpu.memory_space<vmem>>, vector<16x128xf32>
    tpu.vector_store %arg6[%c0_10, %c0_11], %12 {strides = array<i32>} : memref<16x128xf32, #tpu.memory_space<vmem>>, vector<16x128xf32>,
    return
  }
  func.func @transform_0(%arg0: i32) -> (i32, i32) {
    %c0_i32 = arith.constant 0 : i32
    %c0_i32_0 = arith.constant 0 : i32
    return %arg0, %c0_i32 : i32, i32
  }
  func.func @transform_1(%arg0: i32) -> (i32, i32) {
    %c0_i32 = arith.constant 0 : i32
    %c0_i32_0 = arith.constant 0 : i32
    %c0_i32_1 = arith.constant 0 : i32
    return %c0_i32, %c0_i32_0 : i32, i32
  }
  func.func @transform_2(%arg0: i32) -> (i32, i32) {
    %c0_i32 = arith.constant 0 : i32
    %c0_i32_0 = arith.constant 0 : i32
    %c0_i32_1 = arith.constant 0 : i32
    return %c0_i32, %c0_i32_0 : i32, i32
  }
  func.func @transform_3(%arg0: i32) -> (i32, i32) {
    %c0_i32 = arith.constant 0 : i32
    %c0_i32_0 = arith.constant 0 : i32
    %c0_i32_1 = arith.constant 0 : i32
    return %c0_i32, %c0_i32_0 : i32, i32
  }
  func.func @transform_4(%arg0: i32) -> (i32, i32) {
    %c0_i32 = arith.constant 0 : i32
    %c0_i32_0 = arith.constant 0 : i32
    %c0_i32_1 = arith.constant 0 : i32
    return %c0_i32, %c0_i32_0 : i32, i32
  }
  func.func @transform_5(%arg0: i32) -> (i32, i32) {
    %c0_i32 = arith.constant 0 : i32
    %c0_i32_0 = arith.constant 0 : i32
    return %arg0, %c0_i32 : i32, i32
  }
}

</mosaic_0001>

<bundles_post_ra>
// kernel: _forward_impl.1
= control target key start
LH: loop header
LB: loop body
LE: loop exit
PB: predicated region body
PF: predicated region fallthrough
CT: control target
= control target key end

     0   :  { %10 = vsyncpa [#allocation3], 0  ;;  %s191_s21 = smov [#allocation2]   ;;  %s192_s23 = smov 64   ;;  %s250_s0 = inlined_call_operand.vmem [shape: bf16[16,32], index: 0, kind: input, shape index: {}]   ;;  %s251_s1 = inlined_call_operand.vmem [shape: bf16[32,32], index: 1, kind: input, shape index: {}]   ;;  %s252_s2 = inlined_call_operand.vmem [shape: f32[1,32], index: 2, kind: input, shape index: {}]   ;;  %s253_s3 = inlined_call_operand.hbm [shape: bf16[32,128], index: 3, kind: input, shape index: {}]   ;;  %s254_s4 = inlined_call_operand.vmem [shape: f32[1,128], index: 4, kind: input, shape index: {}]   ;;  %s255_s5 = inlined_call_operand.vmem [shape: f32[16,128], index: 5, kind: output, shape index: {}]  }
   0x1   :  { %s21_s20 = sshll.u32 %s253_s3, 4  ;;  %s23_s22 = sshll.u32 %s191_s21, 4  ;;  %s22_s20 = int_to_ptr.hbm [resolvable:$true] %s21_s20  ;;  %s24_s22 = int_to_ptr.vmem [resolvable:$true] %s23_s22 }
   0x2   :  { %s193_s24 = smov 4  }
   0x3   :  { %29 = dma.hbm_to_vmem [thread:$0]  %s22_s20, 256, %s24_s22, [#allocation3], %s192_s23, %s192_s23, %s193_s24  }
   0x4   :  { %189 = dma.done.wait [#allocation3], 256  }
   0x5   :  { %190 = vsyncadd [#allocation3], 4294967040  ;;  %v153_v0 = vld [vmem:[%s251_s1 + $0x8] sm:$0xff]  ;;  %v152_v1 = vld [vmem:[%s251_s1] sm:$0xff]  ;;  %vm64_vm0 = vcmask 261120  }
   0x6   :  { %74 = vmatpush.bf16.msra.mxu0 %v153_v0  ;;  %v151_v2 = vld [vmem:[%s250_s0] sm:$0xff]  ;;  %v155_v3 = vld [vmem:[#allocation2 + $0x8] sm:$0xff] }
   0x7   :  { %114 = vmatpush.bf16.msra.mxu1 %v155_v3  ;;  %v154_v4 = vld [vmem:[#allocation2] sm:$0xff] }
   0x8   :  { %v159_v6 = vld [vmem:[%s252_s2] ss:$0 sm:$0xff] }
   0x9   :  { %v160_v13 = vld [vmem:[%s254_s4] ss:$0 sm:$0xff] }
   0xa   :  { %75 = vmatpush.bf16.msra.mxu0 %v152_v1 }
   0xb   :  { %115 = vmatpush.bf16.msra.mxu1 %v154_v4 }
   0xd   :  { %141 = vmatmul.msk.bf16.vlgmr.msra.gmra.mxu0 %vm64_vm0, %v151_v2 }
  0x8a   :  { %v77_v5 = vpop.f32.mrf.mxu0 }
  0x8b   :  { %v78_v7 = vadd.f32 %v159_v6, %v77_v5 }
  0x8d   :  { %161 = vtanh.f32 %v78_v7 }
  0x92   :  { %v79_v8 = vpop.f32.mrf.mxu0 }
  0x93   :  { %v80_v9 = vadd.f32 %v159_v6, %v79_v8  ;;  %v162_v10 = vpop.eup %161 }
  0x95   :  { %163 = vtanh.f32 %v80_v9 }
  0x9b   :  { %v164_v11 = vpop.eup %163 }
  0x9c   :  { %v84_v12 = vpack.c.bf16 %v164_v11, %v162_v10 }
  0x9e   :  { %150 = vmatmul.msk.bf16.vlgmr.msra.gmra.mxu1 %vm64_vm0, %v84_v12 }
 0x11b   :  { %v117_v14 = vpop.f32.mrf.mxu1 }
 0x11c   :  { %v118_v15 = vadd.f32 %v160_v13, %v117_v14 }
 0x11e   :  { %122 = vst [vmem:[%s255_s5] sm:$0xff] %v118_v15 }
 0x123   :  { %v119_v16 = vpop.f32.mrf.mxu1 }
 0x124   :  { %v120_v17 = vadd.f32 %v160_v13, %v119_v16 }
 0x126   :  { %123 = vst [vmem:[%s255_s5 + $0x8] sm:$0xff] %v120_v17 }
 0x127   :  { %128 = vsyncpa [#allocation3], 1 }

</bundles_post_ra>
